<compile_context>
chip_gen: v7x
topology: tpu7x:2x2x1
jax: 0.10.0
libtpu: 0.0.40
codegen_flags: <defaults>
</compile_context>

<pallas_src>
import jax
import jax.numpy as jnp
from jax.experimental import pallas as pl
from jax.experimental.pallas import tpu as pltpu

# Small-scale, module-consistent sizes (resnet18-style feature width).
RESNET_LAYER_SIZE = 512     # resnet50 would be 2048; shapes scale identically
OUTPUT_SIZE = 32
LANE = 128                  # TPU lane width; fc output dim padded to this


def _round_up(n, m):
    return ((n + m - 1) // m) * m


# --------------------------------------------------------------------------
# Kernel 1: fused Flatten + Linear + ReLU   (y = relu(x @ W^T + b))
# Single-shot: whole x / w / b / y fit trivially in VMEM at these sizes.
# --------------------------------------------------------------------------
def _fc_relu_kernel(x_ref, w_ref, b_ref, o_ref):
    acc = jnp.dot(x_ref[...], w_ref[...], preferred_element_type=jnp.float32)
    o_ref[...] = jnp.maximum(acc + b_ref[...], 0.0).astype(o_ref.dtype)


def fc_relu(x, w_pad, b_pad, out_dim):
    """x: [B, C] f32; w_pad: [C, Op] f32 (torch weight transposed, lane-padded);
    b_pad: [1, Op] f32.  Returns [B, out_dim]."""
    B, C = x.shape
    Cw, Op = w_pad.shape
    assert C == Cw and Op % LANE == 0
    y = pl.pallas_call(
        _fc_relu_kernel,
        out_shape=jax.ShapeDtypeStruct((B, Op), x.dtype),
        grid=(1,),
        in_specs=[
            pl.BlockSpec((B, C), lambda i: (0, 0)),
            pl.BlockSpec((C, Op), lambda i: (0, 0)),
            pl.BlockSpec((1, Op), lambda i: (0, 0)),
        ],
        out_specs=pl.BlockSpec((B, Op), lambda i: (0, 0)),
        compiler_params=pltpu.CompilerParams(
            dimension_semantics=("arbitrary",)),
    )(x, w_pad, b_pad)
    # Padded columns hold relu(0 + 0) == 0; slice them off outside the kernel.
    return y[:, :out_dim]


# --------------------------------------------------------------------------
# Kernel 2: image normalization, lane-dense layout
#   x2: [B*C, H*W];  o = x2 * scale_row + shift_row   (per-row affine)
# scale = 1/(255*std_c), shift = -mean_c/std_c precomputed in the wrapper.
# --------------------------------------------------------------------------
def _normalize_kernel(x_ref, scale_ref, shift_ref, o_ref):
    o_ref[...] = x_ref[...] * scale_ref[...] + shift_ref[...]


def normalize_images(imgs_nchw, mean_c, std_c):
    """imgs_nchw: [B, 3, H, W] f32 in 0..255; mean_c/std_c: [3] f32."""
    B, C, H, W = imgs_nchw.shape
    R, HW = B * C, H * W
    x2 = imgs_nchw.reshape(R, HW)                      # lane-dense last dim
    scale_c = 1.0 / (255.0 * std_c)
    shift_c = -mean_c / std_c
    scale_rows = jnp.tile(scale_c, B).reshape(R, 1)    # row r -> channel r % C
    shift_rows = jnp.tile(shift_c, B).reshape(R, 1)
    # Single block: at demo scale (and even 224x224 with small batch) the
    # whole tensor sits comfortably under the scoped-VMEM budget on
    # v5e/v6e/v7x.
    # TODO(synk): tile rows into ~1-2 MiB blocks for very large batches.
    y2 = pl.pallas_call(
        _normalize_kernel,
        out_shape=jax.ShapeDtypeStruct((R, HW), imgs_nchw.dtype),
        grid=(1,),
        in_specs=[
            pl.BlockSpec((R, HW), lambda i: (0, 0)),
            pl.BlockSpec((R, 1), lambda i: (0, 0)),
            pl.BlockSpec((R, 1), lambda i: (0, 0)),
        ],
        out_specs=pl.BlockSpec((R, HW), lambda i: (0, 0)),
        compiler_params=pltpu.CompilerParams(
            dimension_semantics=("arbitrary",)),
    )(x2, scale_rows, shift_rows)
    return y2.reshape(B, C, H, W)


# --------------------------------------------------------------------------
# Module wrapper (parameters initialized deterministically in-script)
# --------------------------------------------------------------------------
class TorchVisionResNetPallas:
    def __init__(self, output_size, resnet_layer_size=RESNET_LAYER_SIZE,
                 normalize_visual_inputs=False, spatial_output=False,
                 key=jax.random.PRNGKey(0)):
        self.normalize_visual_inputs = normalize_visual_inputs
        self.spatial_output = spatial_output
        self.resnet_layer_size = resnet_layer_size
        self.output_size = output_size

        kw, kb, ke = jax.random.split(key, 3)
        if not spatial_output:
            self.output_shape = (output_size,)
            # torch nn.Linear(resnet_layer_size, output_size): W [O, C], b [O]
            # stored transposed as [C, O]; also kept lane-padded to [C, Op].
            self.fc_w = (0.02 * jax.random.normal(
                kw, (resnet_layer_size, output_size))).astype(jnp.float32)
            self.fc_b = (0.02 * jax.random.normal(
                kb, (output_size,))).astype(jnp.float32)
            o_pad = _round_up(output_size, LANE)
            self.fc_w_pad = jnp.zeros(
                (resnet_layer_size, o_pad),
                jnp.float32).at[:, :output_size].set(self.fc_w)
            self.fc_b_pad = jnp.zeros(
                (1, o_pad), jnp.float32).at[0, :output_size].set(self.fc_b)
        else:
            # nn.Embedding(16, 64)
            self.spatial_embeddings = jax.random.normal(
                ke, (16, 64)).astype(jnp.float32)
            self.output_shape = (resnet_layer_size + 64, 4, 4)

        if normalize_visual_inputs:
            self.mean = jnp.array([0.485, 0.456, 0.406], jnp.float32)
            self.std = jnp.array([0.229, 0.224, 0.225], jnp.float32)
        else:
            self.mean = jnp.zeros((3,), jnp.float32)
            self.std = jnp.ones((3,), jnp.float32)

    def normalize(self, imgs_nchw):
        return normalize_images(imgs_nchw, self.mean, self.std)

    def forward(self, observations):
        if "rgb_features" in observations:
            resnet_output = observations["rgb_features"]
        else:
            rgb = jnp.transpose(observations["rgb"], (0, 3, 1, 2))  # NHWC->NCHW
            _ = self.normalize(rgb)
            # TODO(synk): torchvision ResNet conv backbone (self.cnn) has no
            # in-script Pallas translation; supply 'rgb_features' instead.
            raise NotImplementedError(
                "ResNet backbone not translated; pass observations['rgb_features'].")

        if self.spatial_output:
            b, c, h, w = resnet_output.shape
            # embedding lookup of arange(16) == full table; pure layout glue
            spatial = jnp.broadcast_to(
                self.spatial_embeddings.T.reshape(1, 64, h, w), (b, 64, h, w))
            return jnp.concatenate([resnet_output, spatial], axis=1)
        else:
            b = resnet_output.shape[0]
            x = resnet_output.reshape(b, -1)                       # nn.Flatten()
            return fc_relu(x, self.fc_w_pad, self.fc_b_pad,
                           self.output_size)                       # Linear+ReLU


# --------------------------------------------------------------------------
if __name__ == "__main__":
    key = jax.random.PRNGKey(0)
    k_feat, k_rgb, k_params = jax.random.split(key, 3)

    model = TorchVisionResNetPallas(output_size=OUTPUT_SIZE, key=k_params)

    # Precomputed ResNet features (module's rgb_features path): [B, C, 1, 1]
    rgb_features = jax.random.uniform(
        k_feat, (2, RESNET_LAYER_SIZE, 1, 1), jnp.float32)

    out = model.forward({"rgb_features": rgb_features})
    out = jax.block_until_ready(out)
    assert out.shape == (2, OUTPUT_SIZE)

    # Reference check for the fc hot path
    x_flat = rgb_features.reshape(2, -1)
    ref = jnp.maximum(x_flat @ model.fc_w + model.fc_b[None, :], 0.0)
    assert jnp.allclose(out, ref, atol=1e-4, rtol=1e-4)

    # Exercise the normalize() preprocessing kernel (forward's rgb branch)
    rgb = jax.random.uniform(k_rgb, (2, 16, 16, 3), jnp.float32, 0.0, 255.0)
    rgb_nchw = jnp.transpose(rgb, (0, 3, 1, 2))
    norm = jax.block_until_ready(model.normalize(rgb_nchw))
    assert jnp.allclose(norm, rgb_nchw / 255.0, atol=1e-5, rtol=1e-5)

    # Also check the normalize_visual_inputs=True path numerics
    model_n = TorchVisionResNetPallas(output_size=OUTPUT_SIZE,
                                      normalize_visual_inputs=True,
                                      key=k_params)
    norm2 = jax.block_until_ready(model_n.normalize(rgb_nchw))
    ref2 = (rgb_nchw / 255.0 - model_n.mean.reshape(1, 3, 1, 1)) / \
        model_n.std.reshape(1, 3, 1, 1)
    assert jnp.allclose(norm2, ref2, atol=1e-5, rtol=1e-5)

    print("KERNEL_OK")
</pallas_src>

<mosaic_0001>
module attributes {stable_mosaic.version = 11 : i64} {
  func.func @_fc_relu_kernel(%arg0: i32, %arg1: memref<2x512xf32, #tpu.memory_space<vmem>>, %arg2: memref<512x128xf32, #tpu.memory_space<vmem>>, %arg3: memref<1x128xf32, #tpu.memory_space<vmem>>, %arg4: memref<2x128xf32, #tpu.memory_space<vmem>>) attributes {dimension_semantics = [#tpu.dimension_semantics<arbitrary>], iteration_bounds = array<i64: 1>, scalar_prefetch = 0 : i64, scratch_operands = 0 : i64, tpu.core_type = #tpu.core_type<tc>, window_params = [{pipeline_mode = #tpu.pipeline_mode<synchronous>, transform_indices = @transform_0, window_bounds = array<i64: 2, 512>}, {pipeline_mode = #tpu.pipeline_mode<synchronous>, transform_indices = @transform_1, window_bounds = array<i64: 512, 128>}, {pipeline_mode = #tpu.pipeline_mode<synchronous>, transform_indices = @transform_2, window_bounds = array<i64: 1, 128>}, {pipeline_mode = #tpu.pipeline_mode<synchronous>, transform_indices = @transform_3, window_bounds = array<i64: 2, 128>}]} {
    %c0 = arith.constant 0 : index
    %c0_0 = arith.constant 0 : index
    %0 = vector.load %arg1[%c0, %c0_0] : memref<2x512xf32, #tpu.memory_space<vmem>>, vector<2x512xf32>
    %c0_1 = arith.constant 0 : index
    %c0_2 = arith.constant 0 : index
    %1 = vector.load %arg2[%c0_1, %c0_2] : memref<512x128xf32, #tpu.memory_space<vmem>>, vector<512x128xf32>
    %cst = arith.constant dense<0.000000e+00> : vector<2x128xf32>
    %2 = tpu.matmul %0, %1, %cst {dimension_numbers = #tpu.dot_dimension_numbers<[1], [0], [0], [1], [0, 0, 1, 1], [], []>} : vector<2x512xf32>, vector<512x128xf32>, vector<2x128xf32> -> vector<2x128xf32>
    %c0_3 = arith.constant 0 : index
    %c0_4 = arith.constant 0 : index
    %3 = vector.load %arg3[%c0_3, %c0_4] : memref<1x128xf32, #tpu.memory_space<vmem>>, vector<1x128xf32>
    %4 = vector.broadcast %3 : vector<1x128xf32> to vector<2x128xf32>
    %5 = arith.addf %2, %4 : vector<2x128xf32>
    %cst_5 = arith.constant 0.000000e+00 : f32
    %6 = vector.broadcast %cst_5 : f32 to vector<2x128xf32>
    %7 = arith.maximumf %5, %6 : vector<2x128xf32>
    %c0_6 = arith.constant 0 : index
    %c0_7 = arith.constant 0 : index
    %8 = vector.load %arg4[%c0_6, %c0_7] : memref<2x128xf32, #tpu.memory_space<vmem>>, vector<2x128xf32>
    tpu.vector_store %arg4[%c0_6, %c0_7], %7 {strides = array<i32>} : memref<2x128xf32, #tpu.memory_space<vmem>>, vector<2x128xf32>,
    return
  }
  func.func @transform_0(%arg0: i32) -> (i32, i32) {
    %c0_i32 = arith.constant 0 : i32
    %c0_i32_0 = arith.constant 0 : i32
    %c0_i32_1 = arith.constant 0 : i32
    return %c0_i32, %c0_i32_0 : i32, i32
  }
  func.func @transform_1(%arg0: i32) -> (i32, i32) {
    %c0_i32 = arith.constant 0 : i32
    %c0_i32_0 = arith.constant 0 : i32
    %c0_i32_1 = arith.constant 0 : i32
    return %c0_i32, %c0_i32_0 : i32, i32
  }
  func.func @transform_2(%arg0: i32) -> (i32, i32) {
    %c0_i32 = arith.constant 0 : i32
    %c0_i32_0 = arith.constant 0 : i32
    %c0_i32_1 = arith.constant 0 : i32
    return %c0_i32, %c0_i32_0 : i32, i32
  }
  func.func @transform_3(%arg0: i32) -> (i32, i32) {
    %c0_i32 = arith.constant 0 : i32
    %c0_i32_0 = arith.constant 0 : i32
    %c0_i32_1 = arith.constant 0 : i32
    return %c0_i32, %c0_i32_0 : i32, i32
  }
}

</mosaic_0001>

<bundles_post_ra>
// kernel: tpu_custom_call.1
= control target key start
LH: loop header
LB: loop body
LE: loop exit
PB: predicated region body
PF: predicated region fallthrough
CT: control target
= control target key end

     0   :  { %8 = vsyncpa [#allocation3], 0  ;;  %s579_s0 = inlined_call_operand.hbm [shape: f32[2,512], index: 0, kind: input, shape index: {}]   ;;  %s580_s1 = inlined_call_operand.hbm [shape: f32[512,128], index: 1, kind: input, shape index: {}]   ;;  %s581_s2 = inlined_call_operand.vmem [shape: f32[1,128], index: 2, kind: input, shape index: {}]   ;;  %s582_s3 = inlined_call_operand.hbm [shape: f32[2,128], index: 3, kind: output, shape index: {}]  }
   0x1   :  { %9 = vsyncpa [#allocation6], 0 }
   0x2   :  { %10 = vsyncpa [#allocation4], 0  ;;  %s507_s12 = smov [#allocation2]   ;;  %s508_s14 = smov [#allocation5]  }
   0x3   :  { %s17_s13 = sshll.u32 %s507_s12, 4  ;;  %s26_s15 = sshll.u32 %s508_s14, 4  ;;  %s18_s13 = int_to_ptr.vmem [resolvable:$true] %s17_s13  ;;  %s533_s15 = int_to_ptr.vmem [resolvable:$true] %s26_s15 }
   0x4   :  { %s435_s18 = scalar_lea.hbm %s579_s0, 128 }
   0x5   :  { %p436_p0 = scmp.ne.s32.totalorder %s579_s0, %s435_s18  ;;  %p439_p1 = scmp.lt.u32.totalorder %s435_s18, %s579_s0 }
   0x7   :  { %p441_p2 = pnand %p439_p1, %p436_p0 }
   0x9   :  { %444 = shalt.err (!%p441_p2)
}
   0xa   :  { %s445_s23 = scalar_lea.vmem %s18_s13, 128  ;;  %p450_p4 = scmp.lt.s32.totalorder %s18_s13, %s18_s13 }
   0xb   :  { %p446_p3 = scmp.ne.s32.totalorder %s18_s13, %s445_s23  ;;  %p451_p5 = scmp.lt.s32.totalorder %s445_s23, %s445_s23 }
   0xd   :  { %p452_p6 = por %p451_p5, %p450_p4 }
   0xf   :  { %p453_p7 = pnand %p452_p6, %p446_p3 }
  0x11   :  { %456 = shalt.err (!%p453_p7)
}
  0x12   :  { %20 = dma.hbm_to_vmem [thread:$0]  %s579_s0, 128, %s18_s13, [#allocation3]  }
  0x13   :  { %s457_s28 = scalar_lea.hbm %s580_s1, 8192 }
  0x14   :  { %p458_p8 = scmp.ne.s32.totalorder %s580_s1, %s457_s28  ;;  %p461_p9 = scmp.lt.u32.totalorder %s457_s28, %s580_s1 }
  0x16   :  { %p463_p10 = pnand %p461_p9, %p458_p8 }
  0x18   :  { %466 = shalt.err (!%p463_p10)
}
  0x19   :  { %s467_s6 = scalar_lea.vmem %s533_s15, 8192  ;;  %p472_p12 = scmp.lt.s32.totalorder %s533_s15, %s533_s15 }
  0x1a   :  { %p468_p11 = scmp.ne.s32.totalorder %s533_s15, %s467_s6  ;;  %p473_p13 = scmp.lt.s32.totalorder %s467_s6, %s467_s6 }
  0x1c   :  { %p474_p0 = por %p473_p13, %p472_p12 }
  0x1e   :  { %p475_p1 = pnand %p474_p0, %p468_p11 }
  0x20   :  { %478 = shalt.err (!%p475_p1)
}
  0x21   :  { %s509_s0 = smov 128   ;;  %s510_s7 = smov 8  }
  0x22   :  { %32 = dma.hbm_to_vmem [thread:$0]  %s580_s1, 8192, %s533_s15, [#allocation6], %s509_s0, %s509_s0, %s510_s7  }
  0x23   :  { %501 = dma.done.wait [#allocation3], 128  }
  0x24   :  { %502 = vsyncadd [#allocation3], 4294967168 }
  0x25   :  { %503 = dma.done.wait [#allocation6], 8192  }
  0x26   :  { %504 = vsyncadd [#allocation6], 4294959104  ;;  %v58_v0 = vld [vmem:[#allocation5 + $0x80] sm:$0xff]  ;;  %v59_v1 = vld [vmem:[#allocation5 + $0x88] sm:$0xff]  ;;  %v511_v47 = vmov 1983009808   ;;  %v118_v49 = vlaneseq }
  0x27   :  { %v42_v2 = vld [vmem:[#allocation5] sm:$0xff]  ;;  %v364_v3 = vpack.c.bf16 %v59_v1, %v58_v0  ;;  %v43_v4 = vld [vmem:[#allocation5 + $0x8] sm:$0xff]  ;;  %v60_v11 = vld [vmem:[#allocation5 + $0x90] sm:$0xff]  ;;  %v116_v48 = vunpack.c.l.s4 %v511_v47  ;;  %s512_s11 = smov [#allocation7]  }
  0x28   :  { %v90_v5 = vld [vmem:[#allocation5 + $0x180] sm:$0xff]  ;;  %v91_v6 = vld [vmem:[#allocation5 + $0x188] sm:$0xff]  ;;  %v366_v7 = vpack.c.bf16 %v43_v4, %v42_v2  ;;  %v61_v13 = vld [vmem:[#allocation5 + $0x98] sm:$0xff]  ;;  %v119_v0 = vshrl.u32 %v118_v49, 7  ;;  %s283_s12 = sshll.u32 %s512_s11, 4  ;;  %s284_s12 = int_to_ptr.vmem [resolvable:$true] %s283_s12 }
  0x29   :  { %v396_v8 = vpack.c.bf16 %v91_v6, %v90_v5  ;;  %v74_v9 = vld [vmem:[#allocation5 + $0x100] sm:$0xff]  ;;  %v75_v10 = vld [vmem:[#allocation5 + $0x108] sm:$0xff]  ;;  %365 = vmatprep.subr.bf16.mxu0 %v364_v3  ;;  %v44_v14 = vld [vmem:[#allocation5 + $0x10] sm:$0xff]  ;;  %v368_v16 = vpack.c.bf16 %v61_v13, %v60_v11  ;;  %v117_v63 = vunpack.c.0.s8 %v116_v48  ;;  %s479_s13 = scalar_lea.vmem %s284_s12, 32  ;;  %p484_p3 = scmp.lt.s32.totalorder %s284_s12, %s284_s12 }
  0x2a   :  { %v398_v12 = vpack.c.bf16 %v75_v10, %v74_v9  ;;  %v45_v15 = vld [vmem:[#allocation5 + $0x18] sm:$0xff]  ;;  %367 = vmatpush3.bf16.msra.mxu0 %v366_v7  ;;  %v92_v18 = vld [vmem:[#allocation5 + $0x190] sm:$0xff]  ;;  %v62_v23 = vld [vmem:[#allocation5 + $0xa0] sm:$0xff]  ;;  %p480_p2 = scmp.ne.s32.totalorder %s284_s12, %s479_s13  ;;  %p485_p4 = scmp.lt.s32.totalorder %s479_s13, %s479_s13 }
  0x2b   :  { %397 = vmatprep.subr.bf16.mxu1 %v396_v8  ;;  %v370_v17 = vpack.c.bf16 %v45_v15, %v44_v14  ;;  %v93_v19 = vld [vmem:[#allocation5 + $0x198] sm:$0xff]  ;;  %v76_v20 = vld [vmem:[#allocation5 + $0x110] sm:$0xff]  ;;  %v63_v24 = vld [vmem:[#allocation5 + $0xa8] sm:$0xff]  ;;  %369 = vmatprep.subr.bf16.mxu0 %v368_v16  ;;  %v120_v13 = vsub.s32 %v117_v63, %v119_v0 }
  0x2c   :  { %399 = vmatpush3.bf16.msra.mxu1 %v398_v12  ;;  %v400_v21 = vpack.c.bf16 %v93_v19, %v92_v18  ;;  %v77_v22 = vld [vmem:[#allocation5 + $0x118] sm:$0xff]  ;;  %v372_v26 = vpack.c.bf16 %v63_v24, %v62_v23  ;;  %v46_v27 = vld [vmem:[#allocation5 + $0x20] sm:$0xff]  ;;  %v47_v28 = vld [vmem:[#allocation5 + $0x28] sm:$0xff]  ;;  %p486_p5 = por %p485_p4, %p484_p3 }
  0x2d   :  { %v402_v25 = vpack.c.bf16 %v77_v22, %v76_v20  ;;  %v94_v29 = vld [vmem:[#allocation5 + $0x1a0] sm:$0xff]  ;;  %v95_v30 = vld [vmem:[#allocation5 + $0x1a8] sm:$0xff]  ;;  %v374_v33 = vpack.c.bf16 %v47_v28, %v46_v27  ;;  %v64_v35 = vld [vmem:[#allocation5 + $0xb0] sm:$0xff] }
  0x2e   :  { %401 = vmatprep.subr.bf16.mxu1 %v400_v21  ;;  %v78_v31 = vld [vmem:[#allocation5 + $0x120] sm:$0xff]  ;;  %v79_v32 = vld [vmem:[#allocation5 + $0x128] sm:$0xff]  ;;  %371 = vmatpush3.bf16.msra.mxu0 %v370_v17  ;;  %v404_v34 = vpack.c.bf16 %v95_v30, %v94_v29  ;;  %v65_v36 = vld [vmem:[#allocation5 + $0xb8] sm:$0xff]  ;;  %p487_p6 = pnand %p486_p5, %p480_p2 }
  0x2f   :  { %v48_v37 = vld [vmem:[#allocation5 + $0x30] sm:$0xff]  ;;  %373 = vmatprep.subr.bf16.mxu0 %v372_v26  ;;  %v406_v38 = vpack.c.bf16 %v79_v32, %v78_v31  ;;  %v376_v39 = vpack.c.bf16 %v65_v36, %v64_v35  ;;  %v49_v40 = vld [vmem:[#allocation5 + $0x38] sm:$0xff]  ;;  %v66_v46 = vld [vmem:[#allocation5 + $0xc0] sm:$0xff] }
  0x30   :  { %403 = vmatpush3.bf16.msra.mxu1 %v402_v25  ;;  %v96_v41 = vld [vmem:[#allocation5 + $0x1b0] sm:$0xff]  ;;  %v97_v42 = vld [vmem:[#allocation5 + $0x1b8] sm:$0xff]  ;;  %v67_v50 = vld [vmem:[#allocation5 + $0xc8] sm:$0xff]  ;;  %v378_v51 = vpack.c.bf16 %v49_v40, %v48_v37 }
  0x31   :  { %405 = vmatprep.subr.bf16.mxu1 %v404_v34  ;;  %v408_v43 = vpack.c.bf16 %v97_v42, %v96_v41  ;;  %v80_v44 = vld [vmem:[#allocation5 + $0x130] sm:$0xff]  ;;  %v81_v45 = vld [vmem:[#allocation5 + $0x138] sm:$0xff]  ;;  %v98_v52 = vld [vmem:[#allocation5 + $0x1c0] sm:$0xff]  ;;  %v380_v55 = vpack.c.bf16 %v67_v50, %v66_v46 }
  0x32   :  { %375 = vmatpush3.bf16.msra.mxu0 %v374_v33  ;;  %v99_v53 = vld [vmem:[#allocation5 + $0x1c8] sm:$0xff]  ;;  %v410_v54 = vpack.c.bf16 %v81_v45, %v80_v44  ;;  %v50_v56 = vld [vmem:[#allocation5 + $0x40] sm:$0xff]  ;;  %v68_v61 = vld [vmem:[#allocation5 + $0xd0] sm:$0xff] }
  0x33   :  { %377 = vmatprep.subr.bf16.mxu0 %v376_v39  ;;  %v51_v57 = vld [vmem:[#allocation5 + $0x48] sm:$0xff]  ;;  %v82_v58 = vld [vmem:[#allocation5 + $0x140] sm:$0xff]  ;;  %v412_v59 = vpack.c.bf16 %v99_v53, %v98_v52  ;;  %v69_v62 = vld [vmem:[#allocation5 + $0xd8] sm:$0xff] }
  0x34   :  { %407 = vmatpush3.bf16.msra.mxu1 %v406_v38  ;;  %v83_v60 = vld [vmem:[#allocation5 + $0x148] sm:$0xff]  ;;  %v100_v1 = vld [vmem:[#allocation5 + $0x1d0] sm:$0xff]  ;;  %v101_v2 = vld [vmem:[#allocation5 + $0x1d8] sm:$0xff]  ;;  %v382_v3 = vpack.c.bf16 %v51_v57, %v50_v56  ;;  %v384_v5 = vpack.c.bf16 %v69_v62, %v68_v61 }
  0x35   :  { %409 = vmatprep.subr.bf16.mxu1 %v408_v43  ;;  %v414_v4 = vpack.c.bf16 %v83_v60, %v82_v58  ;;  %v52_v6 = vld [vmem:[#allocation5 + $0x50] sm:$0xff]  ;;  %v53_v7 = vld [vmem:[#allocation5 + $0x58] sm:$0xff]  ;;  %v416_v9 = vpack.c.bf16 %v101_v2, %v100_v1  ;;  %v70_v11 = vld [vmem:[#allocation5 + $0xe0] sm:$0xff] }
  0x36   :  { %379 = vmatpush3.bf16.msra.mxu0 %v378_v51  ;;  %v84_v8 = vld [vmem:[#allocation5 + $0x150] sm:$0xff]  ;;  %v85_v10 = vld [vmem:[#allocation5 + $0x158] sm:$0xff]  ;;  %v71_v12 = vld [vmem:[#allocation5 + $0xe8] sm:$0xff]  ;;  %v386_v16 = vpack.c.bf16 %v53_v7, %v52_v6 }
  0x37   :  { %381 = vmatprep.subr.bf16.mxu0 %v380_v55  ;;  %v102_v14 = vld [vmem:[#allocation5 + $0x1e0] sm:$0xff]  ;;  %v103_v15 = vld [vmem:[#allocation5 + $0x1e8] sm:$0xff]  ;;  %v418_v18 = vpack.c.bf16 %v85_v10, %v84_v8  ;;  %v388_v19 = vpack.c.bf16 %v71_v12, %v70_v11  ;;  %v41_v22 = vld [vmem:[#allocation2] sm:$0xff] }
  0x38   :  { %411 = vmatpush3.bf16.msra.mxu1 %v410_v54  ;;  %v54_v17 = vld [vmem:[#allocation5 + $0x60] sm:$0xff]  ;;  %v55_v20 = vld [vmem:[#allocation5 + $0x68] sm:$0xff]  ;;  %v420_v23 = vpack.c.bf16 %v103_v15, %v102_v14  ;;  %v72_v25 = vld [vmem:[#allocation5 + $0xf0] sm:$0xff]  ;;  %v121_v27 = vrot.slane %v41_v22, %v120_v13  ;;  %v114_v28 = vcombine.high %v41_v22, %v41_v22 }
  0x39   :  { %413 = vmatprep.subr.bf16.mxu1 %v412_v59  ;;  %v86_v21 = vld [vmem:[#allocation5 + $0x160] sm:$0xff]  ;;  %v87_v24 = vld [vmem:[#allocation5 + $0x168] sm:$0xff]  ;;  %v73_v26 = vld [vmem:[#allocation5 + $0xf8] sm:$0xff]  ;;  %v390_v31 = vpack.c.bf16 %v55_v20, %v54_v17 }
  0x3a   :  { %383 = vmatpush3.bf16.msra.mxu0 %v382_v3  ;;  %v104_v29 = vld [vmem:[#allocation5 + $0x1f0] sm:$0xff]  ;;  %v105_v30 = vld [vmem:[#allocation5 + $0x1f8] sm:$0xff]  ;;  %v129_v32 = vcombine.high %v121_v27, %v121_v27  ;;  %v128_v33 = vrot.slane %v114_v28, %v120_v13  ;;  %v422_v34 = vpack.c.bf16 %v87_v24, %v86_v21  ;;  %v392_v35 = vpack.c.bf16 %v73_v26, %v72_v25 }
  0x3b   :  { %385 = vmatprep.subr.bf16.mxu0 %v384_v5  ;;  %v56_v36 = vld [vmem:[#allocation5 + $0x70] sm:$0xff]  ;;  %v57_v37 = vld [vmem:[#allocation5 + $0x78] sm:$0xff]  ;;  %v424_v38 = vpack.c.bf16 %v105_v30, %v104_v29 }
  0x3c   :  { %415 = vmatpush3.bf16.msra.mxu1 %v414_v4  ;;  %v88_v39 = vld [vmem:[#allocation5 + $0x170] sm:$0xff]  ;;  %v89_v40 = vld [vmem:[#allocation5 + $0x178] sm:$0xff]  ;;  %199 = vmatprep.mubr.f32.mxu0 %v129_v32  ;;  %v130_v41 = vcombine.high %v128_v33, %v128_v33  ;;  %v394_v42 = vpack.c.bf16 %v57_v37, %v56_v36 }
  0x3d   :  { %417 = vmatprep.subr.bf16.mxu1 %v416_v9  ;;  %v426_v43 = vpack.c.bf16 %v89_v40, %v88_v39  ;;  %v293_v45 = vld [vmem:[%s581_s2] ss:$0 sm:$0xff] }
  0x3e   :  { %387 = vmatpush3.bf16.msra.mxu0 %v386_v16  ;;  %269 = vmatprep.mubr.f32.mxu1 %v130_v41 }
  0x3f   :  { %389 = vmatprep.subr.bf16.mxu0 %v388_v19 }
  0x40   :  { %419 = vmatpush3.bf16.msra.mxu1 %v418_v18 }
  0x41   :  { %421 = vmatprep.subr.bf16.mxu1 %v420_v23 }
  0x42   :  { %391 = vmatpush3.bf16.msra.mxu0 %v390_v31 }
  0x43   :  { %393 = vmatprep.subr.bf16.mxu0 %v392_v35 }
  0x44   :  { %423 = vmatpush3.bf16.msra.mxu1 %v422_v34 }
  0x45   :  { %425 = vmatprep.subr.bf16.mxu1 %v424_v38 }
  0x46   :  { %395 = vmatpush3.bf16.msra.mxu0 %v394_v42 }
  0x48   :  { %427 = vmatpush3.bf16.msra.mxu1 %v426_v43 }
  0x49   :  { %200 = vmatmul.mubr.f32.vlgmr.msra.gmra.mrb[0].mxu0 %v121_v27 }
  0x4b   :  { %270 = vmatmul.mubr.f32.vlgmr.msra.gmra.mrb[0].mxu1 %v128_v33 }
 0x11c   :  { %v326_v44 = vpop.f32.mrb[0].mxu0 }
 0x11d   :  { %v327_v46 = vpop.f32.mrb[1].mxu0 }
 0x11e   :  { %v361_v47 = vpop.f32.mrb[0].mxu1  ;;  %v328_v48 = vadd.f32 %v327_v46, %v326_v44 }
 0x11f   :  { %v362_v49 = vpop.f32.mrb[1].mxu1 }
 0x120   :  { %v363_v50 = vadd.f32 %v362_v49, %v361_v47  ;;  %v202_v51 = vadd.f32 %v328_v48, %v293_v45 }
 0x122   :  { %v272_v52 = vadd.f32 %v363_v50, %v202_v51 }
 0x124   :  { %v275_v53 = vmax.f32 %v272_v52, 0.0 }
 0x126   :  { %276 = vst [vmem:[#allocation7] sm:$0x3] %v275_v53 }
 0x127   :  { %490 = shalt.err (!%p487_p6)
}
 0x128   :  { %s491_s15 = scalar_lea.hbm %s582_s3, 32 }
 0x129   :  { %p492_p7 = scmp.ne.s32.totalorder %s582_s3, %s491_s15  ;;  %p495_p8 = scmp.lt.u32.totalorder %s491_s15, %s582_s3 }
 0x12b   :  { %p497_p9 = pnand %p495_p8, %p492_p7 }
 0x12d   :  { %500 = shalt.err (!%p497_p9)
}
 0x12e   :  { %286 = dma.vmem_to_hbm [thread:$0]  %s284_s12, 32, %s582_s3, [#allocation4]  }
 0x12f   :  { %505 = dma.done.wait [#allocation4], 32  }
 0x130   :  { %506 = vsyncadd [#allocation4], 4294967264 }
 0x131   :  { %290 = vsyncpa [#allocation3], 1 }
 0x132   :  { %291 = vsyncpa [#allocation6], 1 }
 0x133   :  { %292 = vsyncpa [#allocation4], 1 }

</bundles_post_ra>
